<compile_context>
chip_gen: v6e
topology: v6e:2x2x1
jax: 0.10.0
libtpu: 0.0.40
codegen_flags: <defaults>
</compile_context>

<pallas_src>
import functools

import jax
import jax.numpy as jnp
from jax.experimental import pallas as pl
from jax.experimental.pallas import tpu as pltpu

LANE = 128
SUBLANE = 8
MAX_TILE_B = 512


def _round_up(n, m):
    return ((n + m - 1) // m) * m


# --------------------------------------------------------------------------
# Kernel
# --------------------------------------------------------------------------
def pg_actor_kernel(x_ref, w0_ref, w_ref, b_ref, out_ref, *,
                    num_actions, num_hidden_layers, beta_softmax):
    """One batch tile through the whole actor MLP + masked softmax.

    x_ref:   (TILE_B, IN_pad) bf16  zero-padded input features
    w0_ref:  (IN_pad, D)      bf16  input-layer weight (VMEM-resident)
    w_ref:   (L-1, D, D)      bf16  hidden + output layer weights (resident)
    b_ref:   (L, 1, D)        f32   all biases (resident)
    out_ref: (TILE_B, D)      f32   softmax probs (lanes >= num_actions are 0)
    """
    # input layer
    z = jnp.dot(x_ref[...], w0_ref[...],
                preferred_element_type=jnp.float32) + b_ref[0]
    h = jnp.maximum(z, 0.0).astype(jnp.bfloat16)

    # hidden layers (unrolled at trace time; static trip count)
    for l in range(num_hidden_layers):
        z = jnp.dot(h, w_ref[l], preferred_element_type=jnp.float32) + b_ref[l + 1]
        h = jnp.maximum(z, 0.0).astype(jnp.bfloat16)

    # output layer (no ReLU)
    logits = (jnp.dot(h, w_ref[num_hidden_layers],
                      preferred_element_type=jnp.float32)
              + b_ref[num_hidden_layers + 1])

    # softmax(beta * logits[:, :num_actions]) over the valid action lanes only
    scaled = jnp.float32(beta_softmax) * logits
    lane = jax.lax.broadcasted_iota(jnp.int32, scaled.shape, 1)
    scaled = jnp.where(lane < num_actions, scaled, jnp.float32(-1e30))

    m = jnp.max(scaled, axis=1, keepdims=True)
    e = jnp.exp(scaled - m)            # invalid lanes underflow to exactly 0.0
    denom = jnp.sum(e, axis=1, keepdims=True)
    # exact divide so softmax rows sum to 1 within ~1e-7
    out_ref[...] = (e * pl.reciprocal(denom, approx=False)).astype(out_ref.dtype)


# --------------------------------------------------------------------------
# Parameter packing (done once, outside the per-step forward)
# --------------------------------------------------------------------------
def pack_actor_params(params, num_layers):
    """Pack per-layer (in,out) weights + (1,out) biases into padded slabs.

    Returns (w0 bf16 (IN_pad, D), w_slab bf16 (L-1, D, D), b_slab f32 (L, 1, D)).
    """
    L = num_layers + 2  # input + hidden_0..hidden_{num_layers-1} + output
    assert len(params) == 2 * L
    num_inputs = params[0].shape[0]
    IN_pad = _round_up(num_inputs, LANE)
    max_dim = max(params[0].shape[1],
                  *[max(params[2 * l].shape) for l in range(1, L)])
    D = _round_up(max_dim, LANE)

    w0 = jnp.zeros((IN_pad, D), jnp.float32)
    w0 = w0.at[:num_inputs, :params[0].shape[1]].set(params[0].astype(jnp.float32))

    w_slab = jnp.zeros((L - 1, D, D), jnp.float32)
    b_slab = jnp.zeros((L, 1, D), jnp.float32)
    b0 = params[1].reshape(1, -1).astype(jnp.float32)
    b_slab = b_slab.at[0, :, :b0.shape[1]].set(b0)
    for l in range(1, L):
        w = params[2 * l].astype(jnp.float32)
        b = params[2 * l + 1].reshape(1, -1).astype(jnp.float32)
        w_slab = w_slab.at[l - 1, :w.shape[0], :w.shape[1]].set(w)
        b_slab = b_slab.at[l, :, :b.shape[1]].set(b)
    return w0.astype(jnp.bfloat16), w_slab.astype(jnp.bfloat16), b_slab


# --------------------------------------------------------------------------
# Forward wrapper (jitted: the pad + slice live in the same XLA program)
# --------------------------------------------------------------------------
@functools.partial(jax.jit, static_argnames=("num_actions", "beta_softmax"))
def vanilla_pg_forward(x, w0_slab, w_slab, b_slab, *, num_actions,
                       beta_softmax=1.0):
    """x: (1, B, num_inputs). Returns (B, num_actions) softmax probabilities."""
    assert x.ndim == 3 and x.shape[0] == 1
    x2d = x[0]                               # matches out[0, ...] selection
    B, num_inputs = x2d.shape
    IN_pad, D = w0_slab.shape
    L = b_slab.shape[0]
    assert num_inputs <= IN_pad and num_actions <= D

    # Batch tiling: 8-row-aligned tiles capped at MAX_TILE_B.  For anything
    # beyond a trivial get_action batch, split into >= 2 near-equal tiles so
    # the "parallel" grid axis occupies both v7x TensorCores, and pad B only
    # up to a multiple of that tile (B=300 -> tile 152, pad 304).
    B8 = _round_up(B, SUBLANE)
    if B8 <= 2 * SUBLANE:
        tile_b = B8
    else:
        tile_b = min(MAX_TILE_B, _round_up(pl.cdiv(B8, 2), SUBLANE))
    B_pad = _round_up(B8, tile_b)

    # Single lax.pad under this jit (no separate scatter dispatch); stream the
    # activations in bf16 (kernel accumulates in f32 regardless).
    x_pad = jnp.pad(x2d.astype(jnp.bfloat16),
                    ((0, B_pad - B), (0, IN_pad - num_inputs)))

    kernel = functools.partial(
        pg_actor_kernel,
        num_actions=num_actions,
        num_hidden_layers=L - 2,
        beta_softmax=float(beta_softmax),
    )

    out = pl.pallas_call(
        kernel,
        out_shape=jax.ShapeDtypeStruct((B_pad, D), jnp.float32),
        grid=(B_pad // tile_b,),
        in_specs=[
            pl.BlockSpec((tile_b, IN_pad), lambda i: (i, 0)),    # activations
            pl.BlockSpec((IN_pad, D), lambda i: (0, 0)),         # w0 resident
            pl.BlockSpec((L - 1, D, D), lambda i: (0, 0, 0)),    # w  resident
            pl.BlockSpec((L, 1, D), lambda i: (0, 0, 0)),        # b  resident
        ],
        out_specs=pl.BlockSpec((tile_b, D), lambda i: (i, 0)),   # lane-dense
        compiler_params=pltpu.CompilerParams(
            dimension_semantics=("parallel",)),                  # 2 TCs on v7x
    )(x_pad, w0_slab, w_slab, b_slab)

    return out[:B, :num_actions]


# --------------------------------------------------------------------------
# Init + pure-JAX reference
# --------------------------------------------------------------------------
def init_actor_params(key, num_inputs, num_hidden, num_actions,
                      num_a_continuous=0, num_layers=2):
    """nn.Linear-style init; weights stored (in_features, out_features)."""
    out_dim = num_actions + num_a_continuous * (num_a_continuous + 1)
    layer_shapes = ([(num_inputs, num_hidden)]
                    + [(num_hidden, num_hidden)] * num_layers
                    + [(num_hidden, out_dim)])
    params = []
    for fan_in, fan_out in layer_shapes:
        kw, kb, key = jax.random.split(key, 3)
        bound = 1.0 / jnp.sqrt(fan_in)
        w = jax.random.uniform(kw, (fan_in, fan_out), jnp.float32, -bound, bound)
        b = jax.random.uniform(kb, (1, fan_out), jnp.float32, -bound, bound)
        params += [w, b]
    return tuple(params)


def reference_forward(x, params, num_actions, beta_softmax):
    """Full-precision f32 reference of VanillaPGAgent.forward."""
    h = x[0].astype(jnp.float32)
    L = len(params) // 2
    for l in range(L - 1):
        h = jnp.maximum(h @ params[2 * l] + params[2 * l + 1], 0.0)
    logits = h @ params[2 * (L - 1)] + params[2 * (L - 1) + 1]
    return jax.nn.softmax(beta_softmax * logits[:, :num_actions], axis=1)


# --------------------------------------------------------------------------
if __name__ == "__main__":
    num_inputs = 16
    num_hidden = 32
    num_actions = 8
    num_layers = 2
    beta_softmax = 1.0
    B = 2  # get_action path: small batch of unsqueezed states

    key = jax.random.PRNGKey(0)
    kx, kp, kx2 = jax.random.split(key, 3)

    x = jax.random.normal(kx, (1, B, num_inputs), jnp.float32)
    params = init_actor_params(kp, num_inputs, num_hidden, num_actions,
                               num_a_continuous=0, num_layers=num_layers)

    # Pack parameters once; reuse across every forward call.
    w0_slab, w_slab, b_slab = pack_actor_params(params, num_layers)

    probs = vanilla_pg_forward(x, w0_slab, w_slab, b_slab,
                               num_actions=num_actions,
                               beta_softmax=beta_softmax)
    probs = jax.block_until_ready(probs)

    ref = reference_forward(x, params, num_actions, beta_softmax)
    assert probs.shape == (B, num_actions)
    assert bool(jnp.all(jnp.abs(jnp.sum(probs, axis=1) - 1.0) < 1e-5))
    # bf16 matmuls vs f32 reference: small drift expected
    assert bool(jnp.max(jnp.abs(probs - ref)) < 2e-2)

    # Larger, non-multiple batch: exercises the 2-tile "parallel" grid
    # (two 152-row tiles, padded to 304) plus padded-row/padded-lane handling.
    B2 = 300
    x2 = jax.random.normal(kx2, (1, B2, num_inputs), jnp.float32)
    probs2 = jax.block_until_ready(
        vanilla_pg_forward(x2, w0_slab, w_slab, b_slab,
                           num_actions=num_actions,
                           beta_softmax=beta_softmax))
    ref2 = reference_forward(x2, params, num_actions, beta_softmax)
    assert probs2.shape == (B2, num_actions)
    assert bool(jnp.all(jnp.abs(jnp.sum(probs2, axis=1) - 1.0) < 1e-5))
    assert bool(jnp.max(jnp.abs(probs2 - ref2)) < 2e-2)

    print("KERNEL_OK")
</pallas_src>

<mosaic_0001>
module attributes {stable_mosaic.version = 11 : i64} {
  func.func @pg_actor_kernel(%arg0: i32, %arg1: memref<8x128xbf16, #tpu.memory_space<vmem>>, %arg2: memref<128x128xbf16, #tpu.memory_space<vmem>>, %arg3: memref<3x128x128xbf16, #tpu.memory_space<vmem>>, %arg4: memref<4x1x128xf32, #tpu.memory_space<vmem>>, %arg5: memref<8x128xf32, #tpu.memory_space<vmem>>) attributes {dimension_semantics = [#tpu.dimension_semantics<parallel>], iteration_bounds = array<i64: 1>, scalar_prefetch = 0 : i64, scratch_operands = 0 : i64, tpu.core_type = #tpu.core_type<tc>, window_params = [{transform_indices = @transform_0, window_bounds = array<i64: 8, 128>}, {pipeline_mode = #tpu.pipeline_mode<synchronous>, transform_indices = @transform_1, window_bounds = array<i64: 128, 128>}, {pipeline_mode = #tpu.pipeline_mode<synchronous>, transform_indices = @transform_2, window_bounds = array<i64: 3, 128, 128>}, {pipeline_mode = #tpu.pipeline_mode<synchronous>, transform_indices = @transform_3, window_bounds = array<i64: 4, 1, 128>}, {transform_indices = @transform_4, window_bounds = array<i64: 8, 128>}]} {
    %c0 = arith.constant 0 : index
    %c0_0 = arith.constant 0 : index
    %0 = vector.load %arg1[%c0, %c0_0] : memref<8x128xbf16, #tpu.memory_space<vmem>>, vector<8x128xbf16>
    %c0_1 = arith.constant 0 : index
    %c0_2 = arith.constant 0 : index
    %1 = vector.load %arg2[%c0_1, %c0_2] : memref<128x128xbf16, #tpu.memory_space<vmem>>, vector<128x128xbf16>
    %cst = arith.constant dense<0.000000e+00> : vector<8x128xf32>
    %2 = tpu.matmul %0, %1, %cst {dimension_numbers = #tpu.dot_dimension_numbers<[1], [0], [0], [1], [0, 0, 1, 1], [], []>} : vector<8x128xbf16>, vector<128x128xbf16>, vector<8x128xf32> -> vector<8x128xf32>
    %c0_3 = arith.constant 0 : index
    %c0_4 = arith.constant 0 : index
    %c0_5 = arith.constant 0 : index
    %3 = vector.load %arg4[%c0_3, %c0_4, %c0_5] : memref<4x1x128xf32, #tpu.memory_space<vmem>>, vector<1x1x128xf32>
    %4 = vector.shape_cast %3 : vector<1x1x128xf32> to vector<1x128xf32>
    %5 = vector.broadcast %4 : vector<1x128xf32> to vector<8x128xf32>
    %6 = arith.addf %2, %5 : vector<8x128xf32>
    %cst_6 = arith.constant 0.000000e+00 : f32
    %7 = vector.broadcast %cst_6 : f32 to vector<8x128xf32>
    %8 = arith.maximumf %6, %7 : vector<8x128xf32>
    %9 = arith.truncf %8 : vector<8x128xf32> to vector<8x128xbf16>
    %c0_7 = arith.constant 0 : index
    %c0_8 = arith.constant 0 : index
    %c0_9 = arith.constant 0 : index
    %10 = vector.load %arg3[%c0_7, %c0_8, %c0_9] : memref<3x128x128xbf16, #tpu.memory_space<vmem>>, vector<1x128x128xbf16>
    %11 = vector.shape_cast %10 : vector<1x128x128xbf16> to vector<128x128xbf16>
    %cst_10 = arith.constant dense<0.000000e+00> : vector<8x128xf32>
    %12 = tpu.matmul %9, %11, %cst_10 {dimension_numbers = #tpu.dot_dimension_numbers<[1], [0], [0], [1], [0, 0, 1, 1], [], []>} : vector<8x128xbf16>, vector<128x128xbf16>, vector<8x128xf32> -> vector<8x128xf32>
    %c1 = arith.constant 1 : index
    %c0_11 = arith.constant 0 : index
    %c0_12 = arith.constant 0 : index
    %13 = vector.load %arg4[%c1, %c0_11, %c0_12] : memref<4x1x128xf32, #tpu.memory_space<vmem>>, vector<1x1x128xf32>
    %14 = vector.shape_cast %13 : vector<1x1x128xf32> to vector<1x128xf32>
    %15 = vector.broadcast %14 : vector<1x128xf32> to vector<8x128xf32>
    %16 = arith.addf %12, %15 : vector<8x128xf32>
    %cst_13 = arith.constant 0.000000e+00 : f32
    %17 = vector.broadcast %cst_13 : f32 to vector<8x128xf32>
    %18 = arith.maximumf %16, %17 : vector<8x128xf32>
    %19 = arith.truncf %18 : vector<8x128xf32> to vector<8x128xbf16>
    %c1_14 = arith.constant 1 : index
    %c0_15 = arith.constant 0 : index
    %c0_16 = arith.constant 0 : index
    %20 = vector.load %arg3[%c1_14, %c0_15, %c0_16] : memref<3x128x128xbf16, #tpu.memory_space<vmem>>, vector<1x128x128xbf16>
    %21 = vector.shape_cast %20 : vector<1x128x128xbf16> to vector<128x128xbf16>
    %cst_17 = arith.constant dense<0.000000e+00> : vector<8x128xf32>
    %22 = tpu.matmul %19, %21, %cst_17 {dimension_numbers = #tpu.dot_dimension_numbers<[1], [0], [0], [1], [0, 0, 1, 1], [], []>} : vector<8x128xbf16>, vector<128x128xbf16>, vector<8x128xf32> -> vector<8x128xf32>
    %c2 = arith.constant 2 : index
    %c0_18 = arith.constant 0 : index
    %c0_19 = arith.constant 0 : index
    %23 = vector.load %arg4[%c2, %c0_18, %c0_19] : memref<4x1x128xf32, #tpu.memory_space<vmem>>, vector<1x1x128xf32>
    %24 = vector.shape_cast %23 : vector<1x1x128xf32> to vector<1x128xf32>
    %25 = vector.broadcast %24 : vector<1x128xf32> to vector<8x128xf32>
    %26 = arith.addf %22, %25 : vector<8x128xf32>
    %cst_20 = arith.constant 0.000000e+00 : f32
    %27 = vector.broadcast %cst_20 : f32 to vector<8x128xf32>
    %28 = arith.maximumf %26, %27 : vector<8x128xf32>
    %29 = arith.truncf %28 : vector<8x128xf32> to vector<8x128xbf16>
    %c2_21 = arith.constant 2 : index
    %c0_22 = arith.constant 0 : index
    %c0_23 = arith.constant 0 : index
    %30 = vector.load %arg3[%c2_21, %c0_22, %c0_23] : memref<3x128x128xbf16, #tpu.memory_space<vmem>>, vector<1x128x128xbf16>
    %31 = vector.shape_cast %30 : vector<1x128x128xbf16> to vector<128x128xbf16>
    %cst_24 = arith.constant dense<0.000000e+00> : vector<8x128xf32>
    %32 = tpu.matmul %29, %31, %cst_24 {dimension_numbers = #tpu.dot_dimension_numbers<[1], [0], [0], [1], [0, 0, 1, 1], [], []>} : vector<8x128xbf16>, vector<128x128xbf16>, vector<8x128xf32> -> vector<8x128xf32>
    %c3 = arith.constant 3 : index
    %c0_25 = arith.constant 0 : index
    %c0_26 = arith.constant 0 : index
    %33 = vector.load %arg4[%c3, %c0_25, %c0_26] : memref<4x1x128xf32, #tpu.memory_space<vmem>>, vector<1x1x128xf32>
    %34 = vector.shape_cast %33 : vector<1x1x128xf32> to vector<1x128xf32>
    %35 = vector.broadcast %34 : vector<1x128xf32> to vector<8x128xf32>
    %36 = arith.addf %32, %35 : vector<8x128xf32>
    %cst_27 = arith.constant 1.000000e+00 : f32
    %37 = vector.broadcast %cst_27 : f32 to vector<8x128xf32>
    %38 = arith.mulf %37, %36 : vector<8x128xf32>
    %39 = tpu.iota {dimensions = array<i32: 1>} : vector<8x128xi32>
    %c8_i32 = arith.constant 8 : i32
    %40 = vector.broadcast %c8_i32 : i32 to vector<8x128xi32>
    %41 = arith.cmpi slt, %39, %40 : vector<8x128xi32>
    %cst_28 = arith.constant -1.000000e+30 : f32
    %42 = vector.broadcast %cst_28 : f32 to vector<8x128xf32>
    %43 = arith.select %41, %38, %42 : vector<8x128xi1>, vector<8x128xf32>
    %cst_29 = arith.constant dense<0xFF800000> : vector<8xf32>
    %44 = vector.multi_reduction <maximumf>, %43, %cst_29 [1] : vector<8x128xf32> to vector<8xf32>
    %45 = vector.shape_cast %44 : vector<8xf32> to vector<8x1xf32>
    %46 = vector.broadcast %45 : vector<8x1xf32> to vector<8x128xf32>
    %47 = arith.subf %43, %46 : vector<8x128xf32>
    %48 = math.exp %47 : vector<8x128xf32>
    %cst_30 = arith.constant dense<0.000000e+00> : vector<8xf32>
    %49 = vector.multi_reduction <add>, %48, %cst_30 [1] : vector<8x128xf32> to vector<8xf32>
    %50 = vector.shape_cast %49 : vector<8xf32> to vector<8x1xf32>
    %51 = tpu.reciprocal %50 : vector<8x1xf32> -> vector<8x1xf32>
    %52 = vector.broadcast %51 : vector<8x1xf32> to vector<8x128xf32>
    %53 = arith.mulf %48, %52 : vector<8x128xf32>
    %c0_31 = arith.constant 0 : index
    %c0_32 = arith.constant 0 : index
    %54 = vector.load %arg5[%c0_31, %c0_32] : memref<8x128xf32, #tpu.memory_space<vmem>>, vector<8x128xf32>
    tpu.vector_store %arg5[%c0_31, %c0_32], %53 {strides = array<i32>} : memref<8x128xf32, #tpu.memory_space<vmem>>, vector<8x128xf32>,
    return
  }
  func.func @transform_0(%arg0: i32) -> (i32, i32) {
    %c0_i32 = arith.constant 0 : i32
    %c0_i32_0 = arith.constant 0 : i32
    return %arg0, %c0_i32 : i32, i32
  }
  func.func @transform_1(%arg0: i32) -> (i32, i32) {
    %c0_i32 = arith.constant 0 : i32
    %c0_i32_0 = arith.constant 0 : i32
    %c0_i32_1 = arith.constant 0 : i32
    return %c0_i32, %c0_i32_0 : i32, i32
  }
  func.func @transform_2(%arg0: i32) -> (i32, i32, i32) {
    %c0_i32 = arith.constant 0 : i32
    %c0_i32_0 = arith.constant 0 : i32
    %c0_i32_1 = arith.constant 0 : i32
    %c0_i32_2 = arith.constant 0 : i32
    return %c0_i32, %c0_i32_0, %c0_i32_1 : i32, i32, i32
  }
  func.func @transform_3(%arg0: i32) -> (i32, i32, i32) {
    %c0_i32 = arith.constant 0 : i32
    %c0_i32_0 = arith.constant 0 : i32
    %c0_i32_1 = arith.constant 0 : i32
    %c0_i32_2 = arith.constant 0 : i32
    return %c0_i32, %c0_i32_0, %c0_i32_1 : i32, i32, i32
  }
  func.func @transform_4(%arg0: i32) -> (i32, i32) {
    %c0_i32 = arith.constant 0 : i32
    %c0_i32_0 = arith.constant 0 : i32
    return %arg0, %c0_i32 : i32, i32
  }
}

</mosaic_0001>

<bundles_post_ra>
// kernel: vanilla_pg_forward.1
= control target key start
LH: loop header
LB: loop body
LE: loop exit
PB: predicated region body
PF: predicated region fallthrough
CT: control target
= control target key end

     0   :  { %9 = vsyncpa [#allocation3], 0  ;;  %s858_s0 = inlined_call_operand.vmem [shape: bf16[8,128], index: 0, kind: input, shape index: {}]   ;;  %s859_s1 = inlined_call_operand.hbm [shape: bf16[128,128], index: 1, kind: input, shape index: {}]   ;;  %s860_s2 = inlined_call_operand.hbm [shape: bf16[3,128,128], index: 2, kind: input, shape index: {}]   ;;  %s861_s3 = inlined_call_operand.vmem [shape: f32[4,1,128], index: 3, kind: input, shape index: {}]   ;;  %s862_s4 = inlined_call_operand.vmem [shape: f32[8,128], index: 4, kind: output, shape index: {}]  }
   0x1   :  { %10 = vsyncpa [#allocation5], 0  ;;  %s763_s15 = smov [#allocation2]  }
   0x2   :  { %s18_s16 = sshll.u32 %s763_s15, 4  ;;  %s19_s16 = int_to_ptr.vmem [resolvable:$true] %s18_s16 }
   0x3   :  { %s727_s17 = scalar_lea.vmem %s19_s16, 1024  ;;  %p732_p1 = scmp.lt.s32.totalorder %s19_s16, %s19_s16 }
   0x4   :  { %p728_p0 = scmp.ne.s32.totalorder %s19_s16, %s727_s17  ;;  %p733_p2 = scmp.lt.s32.totalorder %s727_s17, %s727_s17 }
   0x6   :  { %p734_p3 = por %p733_p2, %p732_p1 }
   0x8   :  { %p735_p4 = pnand %p734_p3, %p728_p0 }
   0xa   :  { %738 = shalt.err (!%p735_p4)
}
   0xb   :  { %s764_s18 = smov 64   ;;  %s765_s19 = smov 4  }
   0xc   :  { %24 = dma.hbm_to_vmem [thread:$0]  %s859_s1, 1024, %s19_s16, [#allocation3], %s764_s18, %s764_s18, %s765_s19  }
   0xd   :  { %s766_s22 = smov [#allocation4]  }
   0xe   :  { %s30_s23 = sshll.u32 %s766_s22, 4  ;;  %s31_s23 = int_to_ptr.vmem [resolvable:$true] %s30_s23 }
   0xf   :  { %s747_s24 = scalar_lea.vmem %s31_s23, 3072  ;;  %p752_p6 = scmp.lt.s32.totalorder %s31_s23, %s31_s23 }
  0x10   :  { %p748_p5 = scmp.ne.s32.totalorder %s31_s23, %s747_s24  ;;  %p753_p7 = scmp.lt.s32.totalorder %s747_s24, %s747_s24 }
  0x12   :  { %p754_p8 = por %p753_p7, %p752_p6 }
  0x14   :  { %p755_p9 = pnand %p754_p8, %p748_p5 }
  0x16   :  { %758 = shalt.err (!%p755_p9)
}
  0x17   :  { %36 = dma.hbm_to_vmem [thread:$0]  %s860_s2, 3072, %s31_s23, [#allocation5], %s764_s18, %s764_s18, %s765_s19  }
  0x18   :  { %759 = dma.done.wait [#allocation3], 1024  }
  0x19   :  { %760 = vsyncadd [#allocation3], 4294966272 }
  0x1a   :  { %761 = dma.done.wait [#allocation5], 3072  }
  0x1b   :  { %762 = vsyncadd [#allocation5], 4294964224  ;;  %v767_v0 = vmov 0.0   ;;  %vm768_vm0 = vmmov 0   ;;  %v683_v1 = vld [vmem:[#allocation2 + $0x38] sm:$0xff]   ;;  %v684_v2 = vld [vmem:[#allocation2 + $0x30] sm:$0xff]   ;;  %v502_v58 = vlaneseq }
  0x1c   :  { %597 = vmatprep.subr.bf16.mxu0 %v767_v0  ;;  %613 = vmatprep.mubr.msk.bf16.mxu0 %vm768_vm0, %v767_v0  ;;  %v685_v3 = vld [vmem:[#allocation2 + $0x28] sm:$0xff]   ;;  %v691_v4 = vld [vmem:[#allocation4 + $0x38] sm:$0xff]   ;;  %v686_v5 = vld [vmem:[#allocation2 + $0x20] sm:$0xff]  }
  0x1d   :  { %617 = vmatprep.subr.bf16.mxu1 %v767_v0  ;;  %633 = vmatprep.mubr.msk.bf16.mxu1 %vm768_vm0, %v767_v0  ;;  %v692_v6 = vld [vmem:[#allocation4 + $0x30] sm:$0xff]   ;;  %v687_v7 = vld [vmem:[#allocation2 + $0x18] sm:$0xff]   ;;  %v693_v8 = vld [vmem:[#allocation4 + $0x28] sm:$0xff]   ;;  %v503_v59 = vand.u32 127, %v502_v58 }
  0x1e   :  { %598 = vmatpush3.bf16.msra.mxu0 %v683_v1  ;;  %618 = vmatpush3.bf16.msra.mxu1 %v691_v4  ;;  %v688_v9 = vld [vmem:[#allocation2 + $0x10] sm:$0xff]   ;;  %v694_v10 = vld [vmem:[#allocation4 + $0x20] sm:$0xff]   ;;  %v689_v11 = vld [vmem:[#allocation2 + $0x8] sm:$0xff]  }
  0x1f   :  { %599 = vmatprep.subr.bf16.mxu0 %v767_v0  ;;  %619 = vmatprep.subr.bf16.mxu1 %v767_v0  ;;  %v695_v12 = vld [vmem:[#allocation4 + $0x18] sm:$0xff]   ;;  %v690_v13 = vld [vmem:[#allocation2] sm:$0xff]   ;;  %v696_v14 = vld [vmem:[#allocation4 + $0x10] sm:$0xff]   ;;  %vm504_vm1 = vcmp.lt.s32.totalorder %v503_v59, 8 }
  0x20   :  { %v46_v15 = vld [vmem:[%s858_s0] sm:$0xf]  ;;  %v697_v16 = vld [vmem:[#allocation4 + $0x8] sm:$0xff]   ;;  %v699_v18 = vld [vmem:[#allocation4 + $0x78] sm:$0xff]  }
  0x21   :  { %v698_v17 = vld [vmem:[#allocation4] sm:$0xff]   ;;  %v700_v19 = vld [vmem:[#allocation4 + $0x70] sm:$0xff]   ;;  %v701_v20 = vld [vmem:[#allocation4 + $0x68] sm:$0xff]  }
  0x22   :  { %600 = vmatpush3.bf16.msra.mxu0 %v684_v2  ;;  %620 = vmatpush3.bf16.msra.mxu1 %v692_v6  ;;  %v702_v21 = vld [vmem:[#allocation4 + $0x60] sm:$0xff]   ;;  %v703_v22 = vld [vmem:[#allocation4 + $0x58] sm:$0xff]   ;;  %v704_v23 = vld [vmem:[#allocation4 + $0x50] sm:$0xff]  }
  0x23   :  { %601 = vmatprep.subr.bf16.mxu0 %v767_v0  ;;  %621 = vmatprep.subr.bf16.mxu1 %v767_v0  ;;  %v522_v24 = vld [vmem:[%s861_s3] ss:$0 sm:$0xff]  ;;  %v705_v32 = vld [vmem:[#allocation4 + $0x48] sm:$0xff]   ;;  %v707_v34 = vld [vmem:[#allocation4 + $0xb8] sm:$0xff]  }
  0x24   :  { %v706_v33 = vld [vmem:[#allocation4 + $0x40] sm:$0xff]   ;;  %v708_v35 = vld [vmem:[#allocation4 + $0xb0] sm:$0xff]   ;;  %v709_v36 = vld [vmem:[#allocation4 + $0xa8] sm:$0xff]  }
  0x25   :  { %v710_v37 = vld [vmem:[#allocation4 + $0xa0] sm:$0xff]   ;;  %v711_v38 = vld [vmem:[#allocation4 + $0x98] sm:$0xff]   ;;  %v712_v39 = vld [vmem:[#allocation4 + $0x90] sm:$0xff]  }
  0x26   :  { %602 = vmatpush3.bf16.msra.mxu0 %v685_v3  ;;  %622 = vmatpush3.bf16.msra.mxu1 %v693_v8  ;;  %v532_v40 = vld [vmem:[%s861_s3 + $0x1] ss:$0 sm:$0xff]  ;;  %v713_v48 = vld [vmem:[#allocation4 + $0x88] sm:$0xff]   ;;  %v542_v50 = vld [vmem:[%s861_s3 + $0x2] ss:$0 sm:$0xff] }
  0x27   :  { %603 = vmatprep.subr.bf16.mxu0 %v767_v0  ;;  %623 = vmatprep.subr.bf16.mxu1 %v767_v0  ;;  %v714_v49 = vld [vmem:[#allocation4 + $0x80] sm:$0xff]  }
  0x28   :  { %v552_v60 = vld [vmem:[%s861_s3 + $0x3] ss:$0 sm:$0xff] }
  0x2a   :  { %604 = vmatpush3.bf16.msra.mxu0 %v686_v5  ;;  %624 = vmatpush3.bf16.msra.mxu1 %v694_v10 }
  0x2b   :  { %605 = vmatprep.subr.bf16.mxu0 %v767_v0  ;;  %625 = vmatprep.subr.bf16.mxu1 %v767_v0 }
  0x2e   :  { %606 = vmatpush3.bf16.msra.mxu0 %v687_v7  ;;  %626 = vmatpush3.bf16.msra.mxu1 %v695_v12 }
  0x2f   :  { %607 = vmatprep.subr.bf16.mxu0 %v767_v0  ;;  %627 = vmatprep.subr.bf16.mxu1 %v767_v0 }
  0x32   :  { %608 = vmatpush3.bf16.msra.mxu0 %v688_v9  ;;  %628 = vmatpush3.bf16.msra.mxu1 %v696_v14 }
  0x33   :  { %609 = vmatprep.subr.bf16.mxu0 %v767_v0  ;;  %629 = vmatprep.subr.bf16.mxu1 %v767_v0 }
  0x36   :  { %610 = vmatpush3.bf16.msra.mxu0 %v689_v11  ;;  %630 = vmatpush3.bf16.msra.mxu1 %v697_v16 }
  0x37   :  { %611 = vmatprep.subr.bf16.mxu0 %v767_v0  ;;  %631 = vmatprep.subr.bf16.mxu1 %v767_v0 }
  0x3a   :  { %612 = vmatpush3.bf16.msra.mxu0 %v690_v13  ;;  %632 = vmatpush3.bf16.msra.mxu1 %v698_v17 }
  0x3b   :  { %637 = vmatprep.subr.bf16.mxu0 %v767_v0  ;;  %657 = vmatprep.subr.bf16.mxu1 %v767_v0 }
  0x3d   :  { %614 = vmatmul.mubr.bf16.vlgmr.msra.gmra.mxu0 %v46_v15 }
  0x3e   :  { %653 = vmatprep.mubr.msk.bf16.mxu0 %vm768_vm0, %v767_v0  ;;  %638 = vmatpush3.bf16.msra.mxu0 %v699_v18 }
  0x3f   :  { %639 = vmatprep.subr.bf16.mxu0 %v767_v0 }
  0x42   :  { %640 = vmatpush3.bf16.msra.mxu0 %v700_v19 }
  0x43   :  { %641 = vmatprep.subr.bf16.mxu0 %v767_v0 }
  0x46   :  { %642 = vmatpush3.bf16.msra.mxu0 %v701_v20 }
  0x47   :  { %643 = vmatprep.subr.bf16.mxu0 %v767_v0 }
  0x4a   :  { %644 = vmatpush3.bf16.msra.mxu0 %v702_v21 }
  0x4b   :  { %645 = vmatprep.subr.bf16.mxu0 %v767_v0 }
  0x4e   :  { %646 = vmatpush3.bf16.msra.mxu0 %v703_v22 }
  0x4f   :  { %647 = vmatprep.subr.bf16.mxu0 %v767_v0 }
  0x52   :  { %648 = vmatpush3.bf16.msra.mxu0 %v704_v23 }
  0x53   :  { %649 = vmatprep.subr.bf16.mxu0 %v767_v0 }
  0x56   :  { %650 = vmatpush3.bf16.msra.mxu0 %v705_v32 }
  0x57   :  { %651 = vmatprep.subr.bf16.mxu0 %v767_v0 }
  0x5a   :  { %652 = vmatpush3.bf16.msra.mxu0 %v706_v33 }
  0xfd   :  { %v152_v25 = vpop.f32.mrf.mxu0 }
  0xfe   :  { %v153_v26 = vadd.f32 %v522_v24, %v152_v25 }
  0xff   :  { %v615_v27 = vpop.f32.mrf.mxu0 }
 0x100   :  { %v158_v28 = vmax.f32 %v153_v26, 0.0 }
 0x101   :  { %v155_v29 = vpop.f32.mrf.mxu0 }
 0x102   :  { %v159_v30 = vpack.c.bf16 %v158_v28, %v158_v28 }
 0x103   :  { %v616_v31 = vpop.f32.mrf.mxu0 }
 0x104   :  { %634 = vmatmul.mubr.bf16.vlgmr.msra.gmra.mxu1 %v159_v30 }
 0x105   :  { %673 = vmatprep.mubr.msk.bf16.mxu1 %vm768_vm0, %v767_v0  ;;  %658 = vmatpush3.bf16.msra.mxu1 %v707_v34 }
 0x106   :  { %659 = vmatprep.subr.bf16.mxu1 %v767_v0 }
 0x109   :  { %660 = vmatpush3.bf16.msra.mxu1 %v708_v35 }
 0x10a   :  { %661 = vmatprep.subr.bf16.mxu1 %v767_v0 }
 0x10d   :  { %662 = vmatpush3.bf16.msra.mxu1 %v709_v36 }
 0x10e   :  { %663 = vmatprep.subr.bf16.mxu1 %v767_v0 }
 0x111   :  { %664 = vmatpush3.bf16.msra.mxu1 %v710_v37 }
 0x112   :  { %665 = vmatprep.subr.bf16.mxu1 %v767_v0 }
 0x115   :  { %666 = vmatpush3.bf16.msra.mxu1 %v711_v38 }
 0x116   :  { %667 = vmatprep.subr.bf16.mxu1 %v767_v0 }
 0x119   :  { %668 = vmatpush3.bf16.msra.mxu1 %v712_v39 }
 0x11a   :  { %669 = vmatprep.subr.bf16.mxu1 %v767_v0 }
 0x11d   :  { %670 = vmatpush3.bf16.msra.mxu1 %v713_v48 }
 0x11e   :  { %671 = vmatprep.subr.bf16.mxu1 %v767_v0 }
 0x121   :  { %672 = vmatpush3.bf16.msra.mxu1 %v714_v49 }
 0x1c4   :  { %v266_v41 = vpop.f32.mrf.mxu1 }
 0x1c5   :  { %v267_v42 = vadd.f32 %v532_v40, %v266_v41 }
 0x1c6   :  { %v635_v43 = vpop.f32.mrf.mxu1 }
 0x1c7   :  { %v272_v44 = vmax.f32 %v267_v42, 0.0 }
 0x1c8   :  { %v269_v45 = vpop.f32.mrf.mxu1 }
 0x1c9   :  { %v273_v46 = vpack.c.bf16 %v272_v44, %v272_v44 }
 0x1ca   :  { %v636_v47 = vpop.f32.mrf.mxu1 }
 0x1cb   :  { %654 = vmatmul.mubr.bf16.vlgmr.msra.gmra.mxu0 %v273_v46 }
 0x28b   :  { %v381_v51 = vpop.f32.mrf.mxu0 }
 0x28c   :  { %v382_v52 = vadd.f32 %v542_v50, %v381_v51 }
 0x28d   :  { %v655_v53 = vpop.f32.mrf.mxu0 }
 0x28e   :  { %v387_v54 = vmax.f32 %v382_v52, 0.0 }
 0x28f   :  { %v384_v55 = vpop.f32.mrf.mxu0 }
 0x290   :  { %v388_v56 = vpack.c.bf16 %v387_v54, %v387_v54 }
 0x291   :  { %v656_v57 = vpop.f32.mrf.mxu0 }
 0x292   :  { %674 = vmatmul.mubr.bf16.vlgmr.msra.gmra.mxu1 %v388_v56 }
 0x352   :  { %v496_v61 = vpop.f32.mrf.mxu1 }
 0x353   :  { %v497_v62 = vadd.f32 %v552_v60, %v496_v61 }
 0x354   :  { %v675_v63 = vpop.f32.mrf.mxu1 }
 0x355   :  { %v505_v0 = vsel %vm504_vm1, %v497_v62, -1e+30 }
 0x356   :  { %506 = vmax.xlane.f32.xlu0 %v505_v0  ;;  %v499_v1 = vpop.f32.mrf.mxu1 }
 0x358   :  { %v676_v2 = vpop.f32.mrf.mxu1 }
 0x3df   :  { %v507_v3 = vpop.xlane.xlu0 %506 }
 0x3e0   :  { %v508_v4 = vsub.f32 %v505_v0, %v507_v3 }
 0x3e2   :  { %v509_v5 = vmul.f32 1.442695, %v508_v4 }
 0x3e4   :  { %715 = vpow2.f32 %v509_v5 }
 0x3f1   :  { %v716_v6 = vpop.eup %715 }
 0x3f2   :  { %511 = vadd.xlane.f32.xlu0 %v716_v6 }
 0x47b   :  { %v512_v7 = vpop.xlane.xlu0 %511 }
 0x47c   :  { %717 = vrcp.f32 %v512_v7 }
 0x489   :  { %v718_v8 = vpop.eup %717 }
 0x48a   :  { %v514_v9 = vmul.f32 %v718_v8, %v716_v6 }
 0x48c   :  { %515 = vst [vmem:[%s862_s4] sm:$0xff] %v514_v9 }
 0x48d   :  { %520 = vsyncpa [#allocation3], 1 }
 0x48e   :  { %521 = vsyncpa [#allocation5], 1 }

</bundles_post_ra>
